<compile_context>
chip_gen: v7x
topology: tpu7x:2x2x1
jax: 0.10.0
libtpu: 0.0.40
codegen_flags: <defaults>
</compile_context>

<pallas_src>
import jax
import jax.numpy as jnp
from jax.experimental import pallas as pl
from jax.experimental.pallas import tpu as pltpu

_LANE = 128


def _drop_path_kernel(scale_ref, x_ref, o_ref):
    # scale_ref: VMEM (TB, 1, 1) float32 per-sample scale.
    # x_ref/o_ref: VMEM (TB, TM, 128) tile of the flattened, lane-dense slabs.
    o_ref[...] = x_ref[...] * scale_ref[...].astype(x_ref.dtype)


def _round_down_mult(v: int, m: int) -> int:
    return max(m, (v // m) * m)


def _largest_divisor_leq(n: int, cap: int) -> int:
    cap = max(1, min(cap, n))
    for d in range(cap, 0, -1):
        if n % d == 0:
            return d
    return 1


def _apply_per_sample_scale(x, scales):
    """Multiply x[b] by scales[b] with a tiled, lane-dense Pallas kernel."""
    orig_shape = x.shape
    B = orig_shape[0]
    total = 1
    for d in orig_shape[1:]:
        total *= d
    itemsize = jnp.dtype(x.dtype).itemsize

    # Lane-dense layout: flatten each sample's slab and pad to a multiple of
    # 128 so the trailing dim is always a full 128 lanes (unmasked stores).
    pad = (-total) % _LANE
    x_flat = x.reshape(B, total)
    if pad:
        x_flat = jnp.pad(x_flat, ((0, 0), (0, pad)))
    total_p = total + pad
    M = total_p // _LANE
    x2 = x_flat.reshape(B, M, _LANE)

    # Block sizing: ~4 MiB per block (double-buffered in+out ~16 MiB VMEM).
    target_block_bytes = 4 << 20
    sub = 8 * max(1, 4 // itemsize)          # sublane pack: 8 f32/16 bf16/32 i8
    row_bytes = _LANE * itemsize
    tm_target = _round_down_mult(target_block_bytes // row_bytes, sub)

    if M > tm_target:
        # Large per-sample slab: one sample per block, tile the M axis.
        TB = 1
        TM = tm_target
        if M % TM != 0:
            # Prefer a TM that divides M (no ragged/masked last tile).
            t = TM
            while t >= max(sub, tm_target // 2):
                if M % t == 0:
                    TM = t
                    break
                t -= sub
    else:
        # Small per-sample slab: take the whole slab and pack TB samples.
        TM = M
        slab_bytes = max(1, M * row_bytes)
        TB = max(1, min(B, target_block_bytes // slab_bytes))
        TB = _largest_divisor_leq(B, TB)

    # v7x megacore: keep >= 2 grid steps along a parallel axis when possible.
    if pl.cdiv(B, TB) * pl.cdiv(M, TM) == 1:
        if B >= 2:
            TB = _largest_divisor_leq(B, max(1, B // 2))
        elif M >= 2 * sub:
            TM = _round_down_mult(M // 2, sub)

    grid = (pl.cdiv(B, TB), pl.cdiv(M, TM))

    scales3 = scales.astype(jnp.float32).reshape(B, 1, 1)

    out2 = pl.pallas_call(
        _drop_path_kernel,
        out_shape=jax.ShapeDtypeStruct((B, M, _LANE), x.dtype),
        grid=grid,
        in_specs=[
            # Tiny per-sample scale vector rides along in VMEM and broadcasts.
            pl.BlockSpec((TB, 1, 1), lambda b, m: (b, 0, 0)),
            pl.BlockSpec((TB, TM, _LANE), lambda b, m: (b, m, 0)),
        ],
        out_specs=pl.BlockSpec((TB, TM, _LANE), lambda b, m: (b, m, 0)),
        compiler_params=pltpu.CompilerParams(
            dimension_semantics=("parallel", "parallel"),
            # ~16 MiB of buffers + headroom: safe on v7x (64 MiB physical),
            # well above v5e's 16 MiB default scoped limit.
            vmem_limit_bytes=48 * 1024 * 1024,
        ),
        cost_estimate=pl.CostEstimate(
            flops=B * total_p,
            transcendentals=0,
            bytes_accessed=2 * B * total_p * itemsize + B * 4,
        ),
    )(scales3, x2)

    if pad:
        return out2.reshape(B, total_p)[:, :total].reshape(orig_shape)
    return out2.reshape(orig_shape)


def drop_path_pallas(x, key, drop_prob: float = 0.0, training: bool = False,
                     scale_by_keep: bool = True):
    """Pallas implementation of timm-style drop_path (forward only).

    x: (B, ...) array. Returns array of same shape/dtype.
    """
    if drop_prob == 0.0 or not training:
        return x

    keep_prob = 1.0 - drop_prob
    B = x.shape[0]

    # Per-sample Bernoulli(keep_prob) mask (O(B) glue, not the hot path).
    keep = jax.random.bernoulli(key, p=keep_prob, shape=(B,)).astype(jnp.float32)
    if keep_prob > 0.0 and scale_by_keep:
        keep = keep / keep_prob

    return _apply_per_sample_scale(x, keep)


def drop_path_reference(x, keep_scales):
    # Pure-JAX reference: broadcast multiply of per-sample scale (cast to
    # x.dtype first, matching timm's x.new_empty(...) mask dtype semantics).
    return x * keep_scales.reshape((-1,) + (1,) * (x.ndim - 1)).astype(x.dtype)


def _expected_scales(key, B, drop_prob, scale_by_keep):
    keep_prob = 1.0 - drop_prob
    keep = jax.random.bernoulli(key, p=keep_prob, shape=(B,)).astype(jnp.float32)
    if keep_prob > 0.0 and scale_by_keep:
        keep = keep / keep_prob
    return keep


if __name__ == "__main__":
    key = jax.random.PRNGKey(0)
    kx, kx2, kx3, kmask = jax.random.split(key, 4)

    drop_prob = 0.5
    scale_by_keep = True

    # ---- Case 1: lane-dense path (N*C % 128 == 0), f32, small Swin-like slab.
    B, N, C = 2, 8, 32
    x = jax.random.normal(kx, (B, N, C), dtype=jnp.float32)
    out = drop_path_pallas(x, kmask, drop_prob=drop_prob, training=True,
                           scale_by_keep=scale_by_keep)
    out = jax.block_until_ready(out)
    scales = _expected_scales(kmask, B, drop_prob, scale_by_keep)
    ref = drop_path_reference(x, scales)
    assert out.shape == x.shape and out.dtype == x.dtype
    assert jnp.allclose(out, ref, atol=1e-6, rtol=1e-6)

    # ---- Case 2: padded path (per-sample numel not a multiple of 128).
    x_odd = jax.random.normal(kx2, (2, 8, 24), dtype=jnp.float32)
    out_odd = drop_path_pallas(x_odd, kmask, drop_prob=drop_prob, training=True,
                               scale_by_keep=scale_by_keep)
    out_odd = jax.block_until_ready(out_odd)
    scales_odd = _expected_scales(kmask, 2, drop_prob, scale_by_keep)
    ref_odd = drop_path_reference(x_odd, scales_odd)
    assert jnp.allclose(out_odd, ref_odd, atol=1e-6, rtol=1e-6)

    # ---- Case 3: bf16 input, lane-dense path.
    x_bf16 = jax.random.normal(kx3, (2, 16, 128), dtype=jnp.float32).astype(jnp.bfloat16)
    out_bf16 = drop_path_pallas(x_bf16, kmask, drop_prob=drop_prob, training=True,
                                scale_by_keep=scale_by_keep)
    out_bf16 = jax.block_until_ready(out_bf16)
    scales_bf16 = _expected_scales(kmask, 2, drop_prob, scale_by_keep)
    ref_bf16 = drop_path_reference(x_bf16, scales_bf16)
    assert out_bf16.dtype == jnp.bfloat16
    assert jnp.allclose(out_bf16.astype(jnp.float32),
                        ref_bf16.astype(jnp.float32), atol=1e-2, rtol=1e-2)

    # ---- Case 4: eval-mode / drop_prob=0 path: identity.
    out_eval = drop_path_pallas(x, kmask, drop_prob=drop_prob, training=False)
    out_eval = jax.block_until_ready(out_eval)
    assert jnp.array_equal(out_eval, x)
    out_p0 = drop_path_pallas(x, kmask, drop_prob=0.0, training=True)
    assert jnp.array_equal(out_p0, x)

    print("KERNEL_OK")
</pallas_src>

<mosaic_0001>
module attributes {stable_mosaic.version = 11 : i64} {
  func.func @_drop_path_kernel(%arg0: i32, %arg1: i32, %arg2: memref<1x1x1xf32, #tpu.memory_space<vmem>>, %arg3: memref<1x2x128xf32, #tpu.memory_space<vmem>>, %arg4: memref<1x2x128xf32, #tpu.memory_space<vmem>>) attributes {dimension_semantics = [#tpu.dimension_semantics<parallel>, #tpu.dimension_semantics<parallel>], iteration_bounds = array<i64: 2, 1>, scalar_prefetch = 0 : i64, scratch_operands = 0 : i64, tpu.core_type = #tpu.core_type<tc>, window_params = [{transform_indices = @transform_0, window_bounds = array<i64: 1, 1, 1>}, {transform_indices = @transform_1, window_bounds = array<i64: 1, 2, 128>}, {transform_indices = @transform_2, window_bounds = array<i64: 1, 2, 128>}]} {
    %c0 = arith.constant 0 : index
    %c0_0 = arith.constant 0 : index
    %c0_1 = arith.constant 0 : index
    %0 = vector.load %arg3[%c0, %c0_0, %c0_1] : memref<1x2x128xf32, #tpu.memory_space<vmem>>, vector<1x2x128xf32>
    %c0_2 = arith.constant 0 : index
    %c0_3 = arith.constant 0 : index
    %c0_4 = arith.constant 0 : index
    %1 = vector.load %arg2[%c0_2, %c0_3, %c0_4] : memref<1x1x1xf32, #tpu.memory_space<vmem>>, vector<1x1x1xf32>
    %2 = vector.broadcast %1 : vector<1x1x1xf32> to vector<1x2x128xf32>
    %3 = arith.mulf %0, %2 : vector<1x2x128xf32>
    %c0_5 = arith.constant 0 : index
    %c0_6 = arith.constant 0 : index
    %c0_7 = arith.constant 0 : index
    %4 = vector.load %arg4[%c0_5, %c0_6, %c0_7] : memref<1x2x128xf32, #tpu.memory_space<vmem>>, vector<1x2x128xf32>
    tpu.vector_store %arg4[%c0_5, %c0_6, %c0_7], %3 {strides = array<i32>} : memref<1x2x128xf32, #tpu.memory_space<vmem>>, vector<1x2x128xf32>,
    return
  }
  func.func @transform_0(%arg0: i32, %arg1: i32) -> (i32, i32, i32) {
    %c0_i32 = arith.constant 0 : i32
    %c0_i32_0 = arith.constant 0 : i32
    %c0_i32_1 = arith.constant 0 : i32
    return %arg0, %c0_i32, %c0_i32_0 : i32, i32, i32
  }
  func.func @transform_1(%arg0: i32, %arg1: i32) -> (i32, i32, i32) {
    %c0_i32 = arith.constant 0 : i32
    %c0_i32_0 = arith.constant 0 : i32
    return %arg0, %arg1, %c0_i32 : i32, i32, i32
  }
  func.func @transform_2(%arg0: i32, %arg1: i32) -> (i32, i32, i32) {
    %c0_i32 = arith.constant 0 : i32
    %c0_i32_0 = arith.constant 0 : i32
    return %arg0, %arg1, %c0_i32 : i32, i32, i32
  }
}

</mosaic_0001>

<bundles_post_ra>
// kernel: tpu_custom_call.1
= control target key start
LH: loop header
LB: loop body
LE: loop exit
PB: predicated region body
PF: predicated region fallthrough
CT: control target
= control target key end

     0   :  { %7 = vsyncpa [#allocation3], 0  ;;  %s567_s0 = inlined_call_operand.vmem [shape: f32[2,1,1], index: 0, kind: input, shape index: {}]   ;;  %s568_s1 = inlined_call_operand.vmem [shape: f32[2,2,128], index: 1, kind: input, shape index: {}]   ;;  %s569_s2 = inlined_call_operand.hbm [shape: f32[2,2,128], index: 2, kind: output, shape index: {}]  }
   0x1   :  { %9 = vsyncpa [#allocation3 + $0x1], 0  ;;  %s452_s9 = smov 0   ;;  %s454_s10 = smov 0  }
   0x2   :  { %s456_s11 = smov 0   ;;  %s458_s12 = smov 0  }
   0x3   :  { %s460_s13 = smov 0   ;;  %s462_s14 = smov 0  }
   0x4 LB: > { %s286_s15 = sadd.s32 4294967295, %s433_s14   ;;  %s287_s16 = sadd.s32 4294967294, %s433_s14   ;;  %s433_s14 = sphi %s462_s14, %s15_s14   ;;  %s429_s13 = sphi %s460_s13, %s576_s13   ;;  %s425_s12 = sphi %s458_s12, %s575_s12   ;;  %s421_s11 = sphi %s456_s11, %s574_s11   ;;  %s417_s10 = sphi %s454_s10, %s573_s10   ;;  %s413_s9 = sphi %s452_s9, %s572_s9  }
   0x5   : > { %s27_s17 = sadd.s32 1, %s429_s13  ;;  %s90_s18 = sadd.s32 1, %s421_s11 }
   0x6   : > { %p29_p0 = scmp.ge.s32.totalorder %s27_s17, 2  ;;  %p100_p1 = scmp.ne.s32.totalorder %s421_s11, %s417_s10 }
   0x7   : > { %p101_p2 = scmp.eq.s32.totalorder %s286_s15, 1  ;;  %p106_p3 = scmp.ne.s32.totalorder %s417_s10, %s413_s9 }
   0x8   : > { %s578_s17 = smov (%p29_p0, %s27_s17), 0  ;;  %p107_p5 = scmp.eq.s32.totalorder %s287_s16, 1 }
   0x9   : > { %p492_p4 = por %p101_p2, %p100_p1  ;;  %s85_s20 = ssub.s32 %s429_s13, %s578_s17 }
   0xa   : > { %p290_p6 = scmp.ge.s32.totalorder %s433_s14, 1  ;;  %p88_p7 = scmp.eq.s32.totalorder %s85_s20, 0 }
   0xb   : > { %p499_p8 = por %p107_p5, %p106_p3  ;;  %p141_p9 = scmp.lt.s32.totalorder %s433_s14, 3 }
   0xc   : > { %s505_s22 = scalar_select %p88_p7, %s421_s11, %s90_s18  }
   0xd   : > { %p142_p10 = pnand %p290_p6, %p141_p9 }
   0xe   : > { %p168_p11 = scmp.lt.s32.totalorder (!%p142_p10), %s425_s12, 1  ;;  %v435_v0 = vmov (!%p142_p10), 0   ;;  %s165_s27 = sand.u32 (!%p142_p10), 1, %s417_s10  }
   0xf   : > { %145 = sbr.rel (%p142_p10) target bundleno = 170 (0xaa), region = 28  ;;  %354 = vset.pattern.permute.xlu0 (!%p142_p10), %v435_v0  ;;  %s291_s29 = sshll.u32 (!%p142_p10), %s165_s27, 1 }
  0x10   : > { %s295_s5 = sshll.u32 (!%p142_p10), %s425_s12, 5  ;;  %s167_s6 = scalar_lea.vmem (!%p142_p10), [#allocation2], %s291_s29 }
  0x11   : > { %s206_s7 = sshll.u32 (!%p142_p10), %s167_s6, 4  ;;  %s520_s16 = scalar_lea.hbm (!%p142_p10), %s569_s2, %s295_s5  ;;  %s522_s7 = int_to_ptr.vmem [resolvable:$true] %s206_s7 }
  0x12   : > { %s192_s18 = scalar_lea.sflag (!%p142_p10), [#allocation3], %s165_s27  ;;  %s355_s20 = scalar_lea.vmem (!%p142_p10), %s522_s7, 32 }
  0x13   : > { %p356_p12 = scmp.ne.s32.totalorder (!%p142_p10), %s522_s7, %s355_s20 }
  0x15   : > { %p357_p13 = pnand (!%p142_p10), %p356_p12, %p492_p4 }
  0x16   : > { %s169_s23 = scalar_select %p168_p11, %s425_s12, 1 }
  0x17   : > { %p358_p0 = pneg %p357_p13  ;;  %s436_s12 = smov [#allocation2]  }
  0x18   : > { %s170_s26 = scalar_lea.vmem %s567_s0, %s169_s23  ;;  %s292_s28 = sshll.u32 %s169_s23, 1 }
  0x19   : > { %v293_v1 = vld [vmem:[%s170_s26] ss:$0 sm:$0xff]  ;;  %s177_s4 = scalar_lea.vmem %s568_s1, %s292_s28  ;;  %s359_s23 = sshll.u32 %s436_s12, 4  ;;  %s360_s23 = int_to_ptr.vmem [resolvable:$false] %s359_s23 }
  0x1a   : > { %186 = vperm.xlu0 %354, %v293_v1   ;;  %v178_v2 = vld [vmem:[%s177_s4] sm:$0x3]  ;;  %s361_s24 = scalar_lea.vmem %s360_s23, 64  ;;  %p362_p1 = scmp.lt.s32.totalorder %s522_s7, %s360_s23 }
  0x1b   : > { %p363_p2 = scmp.lt.s32.totalorder %s361_s24, %s355_s20 }
  0x1d   : > { %p364_p3 = por %p363_p2, %p362_p1 }
  0x1f   : > { %p365_p5 = pnand %p364_p3, %p358_p0 }
  0x99   : > { %v187_v3 = vpop.permute.xlu0 %186 }
  0x9a   : > { %v189_v4 = vmul.f32 %v187_v3, %v178_v2 }
  0x9c   : > { %190 = vst [vmem:[%s167_s6] sm:$0x3] %v189_v4 }
  0x9d   : > { %368 = shalt.err (!%p365_p5)
}
  0x9e   : > { %s369_s25 = scalar_lea.hbm %s520_s16, 32  ;;  %s373_s28 = scalar_lea.hbm %s569_s2, 64 }
  0x9f   : > { %p370_p6 = scmp.ne.s32.totalorder %s520_s16, %s369_s25  ;;  %p374_p10 = scmp.lt.u32.totalorder %s520_s16, %s569_s2 }
  0xa0   : > { %p375_p11 = scmp.lt.u32.totalorder %s373_s28, %s369_s25  ;;  %p377_p13 = scmp.lt.u32.totalorder %s369_s25, %s520_s16 }
  0xa1   : > { %p371_p7 = pnand %p370_p6, %p492_p4 }
  0xa2   : > { %p376_p12 = por %p375_p11, %p374_p10 }
  0xa3   : > { %p372_p9 = pneg %p371_p7 }
  0xa4   : > { %p378_p0 = por %p377_p13, %p376_p12 }
  0xa6   : > { %p379_p1 = pnand %p378_p0, %p372_p9 }
  0xa8   : > { %382 = shalt.err (!%p379_p1)
}
  0xa9   : > { %298 = dma.vmem_to_hbm [thread:$0]  (%p492_p4), %s522_s7, 32, %s520_s16, %s192_s18  }
  0xaa PF: > { %p304_p2 = scmp.ge.s32.totalorder %s433_s14, 2  ;;  %s218_s3 = sand.u32 1, %s413_s9  }
  0xab   : > { %s219_s4 = scalar_lea.sflag [#allocation3], %s218_s3 }
  0xac   : > { %p301_p3 = pnand %p304_p2, %p499_p8 }
  0xae   : > { %408 = dma.done.wait (!%p301_p3), %s219_s4, 32  }
  0xaf   : > { %410 = vsyncadd (!%p301_p3), %s219_s4, 4294967264  ;;  %s15_s14 = sadd.s32 1, %s433_s14   ;;  %s572_s9 = smov %s417_s10 }
  0xb0   : > { %p12_p5 = scmp.ge.s32.totalorder %s15_s14, 4   ;;  %s573_s10 = smov %s421_s11 }
  0xb1   : > { %s574_s11 = smov %s505_s22  ;;  %s575_s12 = smov %s429_s13 }
  0xb2   : > { %s576_s13 = smov %s578_s17  ;;  %14 = sbr.rel (!%p12_p5) target bundleno = 4 (0x4), region = 66 }
  0xb9   :  { %224 = vsyncpa [#allocation3], 1 }
  0xba   :  { %226 = vsyncpa [#allocation3 + $0x1], 1 }

</bundles_post_ra>
